<compile_context>
chip_gen: v6e
topology: v6e:2x2x1
jax: 0.10.0
libtpu: 0.0.40
codegen_flags: <defaults>
</compile_context>

<pallas_src>
import functools

import jax
import jax.numpy as jnp
from jax.experimental import pallas as pl
from jax.experimental.pallas import tpu as pltpu

LANE = 128      # TPU lane width; feature dims padded to multiples of it
MAX_TB = 1024   # cap on rows per batch tile (keeps VMEM small on all gens)


def _round_up(n: int, m: int) -> int:
    return ((n + m - 1) // m) * m


def _choose_batch_tiling(batch: int):
    """Pick (tile_rows, padded_batch).

    * Tile rows are sublane-aligned (multiple of 8), 128-aligned once large
      enough, and capped at MAX_TB so per-step work dwarfs grid-step overhead.
    * The padded batch always yields >= 2 tiles so the "parallel" grid axis
      shards across both TensorCores on v7x (no-op on v5e/v6e).
    """
    b = max(int(batch), 1)
    tb = min(MAX_TB, _round_up(pl.cdiv(b, 2), 8))
    if tb >= LANE:
        tb = (tb // LANE) * LANE          # big tiles: whole MXU passes per layer
    b_pad = max(_round_up(b, tb), 2 * tb)  # guarantee >= 2 grid tiles
    return tb, b_pad


def _mlp_kernel(x_ref,
                w1_ref, b1_ref,
                w2_ref, b2_ref,
                w3_ref, b3_ref,
                w4_ref, b4_ref,
                w5_ref, b5_ref,
                o_ref):
    """Fused 5-layer MLP forward on one (TB, IN_PAD) batch tile.

    x_ref: bf16 [TB, IN_PAD]; weights bf16; biases f32 [1, OUT_PAD].
    Matmuls run on the MXU with f32 accumulation; bias-add / ReLU are f32.
    Dropout (eval mode) is the identity.
    """

    def layer(h_bf16, w_ref, b_ref, relu):
        y = jnp.dot(h_bf16, w_ref[...], preferred_element_type=jnp.float32)
        y = y + b_ref[...]                  # [1, out] broadcasts over the tile
        if relu:
            # ReLU in f32, then immediately narrow to bf16: same numerics as
            # casting at the next matmul, half the live activation footprint.
            y = jnp.maximum(y, 0.0).astype(jnp.bfloat16)
        return y

    h = x_ref[...]                          # bf16
    h = layer(h, w1_ref, b1_ref, relu=True)
    h = layer(h, w2_ref, b2_ref, relu=True)
    h = layer(h, w3_ref, b3_ref, relu=True)
    h = layer(h, w4_ref, b4_ref, relu=True)
    y = layer(h, w5_ref, b5_ref, relu=False)   # final Linear: no ReLU/dropout
    o_ref[...] = y.astype(o_ref.dtype)         # bf16 store (halved writeback)


def pad_params_for_tpu(params):
    """Zero-pad every (W:[in,out], b:[1,out]) to lane-dense multiples of 128.

    Weights cast to bf16 (MXU operand dtype); biases stay f32.  Padded
    columns are exactly zero so they never contaminate real outputs.
    """
    padded = []
    for w, b in params:
        fi, fo = w.shape
        fi_p, fo_p = _round_up(fi, LANE), _round_up(fo, LANE)
        w_p = jnp.zeros((fi_p, fo_p), jnp.bfloat16)
        w_p = w_p.at[:fi, :fo].set(w.astype(jnp.bfloat16))
        b_p = jnp.zeros((1, fo_p), jnp.float32)
        b_p = b_p.at[:, :fo].set(jnp.reshape(b, (1, -1)).astype(jnp.float32))
        padded.append((w_p, b_p))
    return padded


@functools.partial(jax.jit, static_argnames=("num_classes",))
def _classifier_dnn_forward(x, flat_params, *, num_classes):
    """x: [B, input_size] f32.  flat_params: 10 pre-padded arrays (w,b)x5."""
    B, input_size = x.shape
    in_pad = flat_params[0].shape[0]
    out_pad = flat_params[-2].shape[1]
    tb, b_pad = _choose_batch_tiling(B)

    # Pad batch rows + input features inside the jit (zero rows/cols are inert).
    x_pad = jnp.zeros((b_pad, in_pad), jnp.bfloat16)
    x_pad = x_pad.at[:B, :input_size].set(x.astype(jnp.bfloat16))

    in_specs = [pl.BlockSpec((tb, in_pad), lambda i: (i, 0))]
    for p in flat_params:
        # Full-array block, constant index_map -> resident in VMEM for the
        # whole grid (loaded once, amortized over all batch tiles).
        in_specs.append(pl.BlockSpec(p.shape, lambda i: (0, 0)))

    out = pl.pallas_call(
        _mlp_kernel,
        out_shape=jax.ShapeDtypeStruct((b_pad, out_pad), jnp.bfloat16),
        grid=(b_pad // tb,),
        in_specs=in_specs,
        out_specs=pl.BlockSpec((tb, out_pad), lambda i: (i, 0)),
        compiler_params=pltpu.CompilerParams(
            dimension_semantics=("parallel",)),   # megacore-shard batch tiles
    )(x_pad, *flat_params)

    # Slice off padding; return f32 logits (kernel output is bf16).
    return out[:B, :num_classes].astype(jnp.float32)


class ClassifierDNNPallas:
    """Eval-mode ClassifierDNN forward.

    Pads / bf16-casts the weights ONCE at construction, hoisting ~20 tiny
    eager XLA ops out of every forward call.
    """

    def __init__(self, params, num_classes):
        self.num_classes = int(num_classes)
        self.flat_params = tuple(
            jax.device_put(p)
            for wb in pad_params_for_tpu(params) for p in wb)

    def __call__(self, x):
        return _classifier_dnn_forward(x, self.flat_params,
                                       num_classes=self.num_classes)


def init_classifier_dnn_params(key, input_size, num_classes):
    """Init mirroring nn.Linear's U(-1/sqrt(fan_in), +1/sqrt(fan_in)).

    Weights stored [in, out] (y = x @ W + b, equivalent to PyTorch x @ W.T + b).
    """
    dims = [
        input_size,
        int(input_size * 3 / 4),
        int(input_size * 2 / 4),
        int(input_size * 1 / 4),
        int(input_size * 1 / 8),
        num_classes,
    ]
    params = []
    for i in range(len(dims) - 1):
        fan_in, fan_out = dims[i], dims[i + 1]
        key, kw, kb = jax.random.split(key, 3)
        bound = 1.0 / jnp.sqrt(jnp.float32(fan_in))
        w = jax.random.uniform(kw, (fan_in, fan_out), jnp.float32,
                               minval=-bound, maxval=bound)
        b = jax.random.uniform(kb, (1, fan_out), jnp.float32,
                               minval=-bound, maxval=bound)
        params.append((w, b))
    return params


def reference_forward(x, params):
    """Pure-JAX reference using the same padded bf16 weights / f32 accumulation."""
    B, input_size = x.shape
    num_classes = params[-1][0].shape[1]
    padded_params = pad_params_for_tpu(params)
    in_pad = padded_params[0][0].shape[0]

    h = jnp.zeros((B, in_pad), jnp.float32).at[:, :input_size].set(x)
    h = h.astype(jnp.bfloat16)
    for i, (w, b) in enumerate(padded_params):
        y = jnp.dot(h.astype(jnp.bfloat16), w,
                    preferred_element_type=jnp.float32) + b
        if i < len(padded_params) - 1:
            y = jnp.maximum(y, 0.0)
        h = y
    return h[:, :num_classes]


if __name__ == "__main__":
    input_size = 128     # -> hidden dims 96, 64, 32, 16 (lane-padded to 128)
    num_classes = 8      # lane-padded to 128 inside the kernel, sliced back
    batch = 2            # padded internally; grid always has >= 2 tiles

    key = jax.random.PRNGKey(0)
    k_x, k_p = jax.random.split(key)
    x = jax.random.normal(k_x, (batch, input_size), dtype=jnp.float32)
    params = init_classifier_dnn_params(k_p, input_size, num_classes)

    model = ClassifierDNNPallas(params, num_classes)
    out = jax.block_until_ready(model(x))

    ref = reference_forward(x, params)
    assert out.shape == (batch, num_classes), out.shape
    assert jnp.allclose(out, ref, atol=1e-2, rtol=1e-2), "mismatch vs reference"

    print("KERNEL_OK")
</pallas_src>

<mosaic_0001>
module attributes {stable_mosaic.version = 11 : i64} {
  func.func @_mlp_kernel(%arg0: i32, %arg1: memref<8x128xbf16, #tpu.memory_space<vmem>>, %arg2: memref<128x128xbf16, #tpu.memory_space<vmem>>, %arg3: memref<1x128xf32, #tpu.memory_space<vmem>>, %arg4: memref<128x128xbf16, #tpu.memory_space<vmem>>, %arg5: memref<1x128xf32, #tpu.memory_space<vmem>>, %arg6: memref<128x128xbf16, #tpu.memory_space<vmem>>, %arg7: memref<1x128xf32, #tpu.memory_space<vmem>>, %arg8: memref<128x128xbf16, #tpu.memory_space<vmem>>, %arg9: memref<1x128xf32, #tpu.memory_space<vmem>>, %arg10: memref<128x128xbf16, #tpu.memory_space<vmem>>, %arg11: memref<1x128xf32, #tpu.memory_space<vmem>>, %arg12: memref<8x128xbf16, #tpu.memory_space<vmem>>) attributes {dimension_semantics = [#tpu.dimension_semantics<parallel>], iteration_bounds = array<i64: 2>, scalar_prefetch = 0 : i64, scratch_operands = 0 : i64, tpu.core_type = #tpu.core_type<tc>, window_params = [{transform_indices = @transform_0, window_bounds = array<i64: 8, 128>}, {pipeline_mode = #tpu.pipeline_mode<synchronous>, transform_indices = @transform_1, window_bounds = array<i64: 128, 128>}, {pipeline_mode = #tpu.pipeline_mode<synchronous>, transform_indices = @transform_2, window_bounds = array<i64: 1, 128>}, {pipeline_mode = #tpu.pipeline_mode<synchronous>, transform_indices = @transform_3, window_bounds = array<i64: 128, 128>}, {pipeline_mode = #tpu.pipeline_mode<synchronous>, transform_indices = @transform_4, window_bounds = array<i64: 1, 128>}, {pipeline_mode = #tpu.pipeline_mode<synchronous>, transform_indices = @transform_5, window_bounds = array<i64: 128, 128>}, {pipeline_mode = #tpu.pipeline_mode<synchronous>, transform_indices = @transform_6, window_bounds = array<i64: 1, 128>}, {pipeline_mode = #tpu.pipeline_mode<synchronous>, transform_indices = @transform_7, window_bounds = array<i64: 128, 128>}, {pipeline_mode = #tpu.pipeline_mode<synchronous>, transform_indices = @transform_8, window_bounds = array<i64: 1, 128>}, {pipeline_mode = #tpu.pipeline_mode<synchronous>, transform_indices = @transform_9, window_bounds = array<i64: 128, 128>}, {pipeline_mode = #tpu.pipeline_mode<synchronous>, transform_indices = @transform_10, window_bounds = array<i64: 1, 128>}, {transform_indices = @transform_11, window_bounds = array<i64: 8, 128>}]} {
    %c0 = arith.constant 0 : index
    %c0_0 = arith.constant 0 : index
    %0 = vector.load %arg1[%c0, %c0_0] : memref<8x128xbf16, #tpu.memory_space<vmem>>, vector<8x128xbf16>
    %c0_1 = arith.constant 0 : index
    %c0_2 = arith.constant 0 : index
    %1 = vector.load %arg2[%c0_1, %c0_2] : memref<128x128xbf16, #tpu.memory_space<vmem>>, vector<128x128xbf16>
    %cst = arith.constant dense<0.000000e+00> : vector<8x128xf32>
    %2 = tpu.matmul %0, %1, %cst {dimension_numbers = #tpu.dot_dimension_numbers<[1], [0], [0], [1], [0, 0, 1, 1], [], []>} : vector<8x128xbf16>, vector<128x128xbf16>, vector<8x128xf32> -> vector<8x128xf32>
    %c0_3 = arith.constant 0 : index
    %c0_4 = arith.constant 0 : index
    %3 = vector.load %arg3[%c0_3, %c0_4] : memref<1x128xf32, #tpu.memory_space<vmem>>, vector<1x128xf32>
    %4 = vector.broadcast %3 : vector<1x128xf32> to vector<8x128xf32>
    %5 = arith.addf %2, %4 : vector<8x128xf32>
    %cst_5 = arith.constant 0.000000e+00 : f32
    %6 = vector.broadcast %cst_5 : f32 to vector<8x128xf32>
    %7 = arith.maximumf %5, %6 : vector<8x128xf32>
    %8 = arith.truncf %7 : vector<8x128xf32> to vector<8x128xbf16>
    %c0_6 = arith.constant 0 : index
    %c0_7 = arith.constant 0 : index
    %9 = vector.load %arg4[%c0_6, %c0_7] : memref<128x128xbf16, #tpu.memory_space<vmem>>, vector<128x128xbf16>
    %cst_8 = arith.constant dense<0.000000e+00> : vector<8x128xf32>
    %10 = tpu.matmul %8, %9, %cst_8 {dimension_numbers = #tpu.dot_dimension_numbers<[1], [0], [0], [1], [0, 0, 1, 1], [], []>} : vector<8x128xbf16>, vector<128x128xbf16>, vector<8x128xf32> -> vector<8x128xf32>
    %c0_9 = arith.constant 0 : index
    %c0_10 = arith.constant 0 : index
    %11 = vector.load %arg5[%c0_9, %c0_10] : memref<1x128xf32, #tpu.memory_space<vmem>>, vector<1x128xf32>
    %12 = vector.broadcast %11 : vector<1x128xf32> to vector<8x128xf32>
    %13 = arith.addf %10, %12 : vector<8x128xf32>
    %cst_11 = arith.constant 0.000000e+00 : f32
    %14 = vector.broadcast %cst_11 : f32 to vector<8x128xf32>
    %15 = arith.maximumf %13, %14 : vector<8x128xf32>
    %16 = arith.truncf %15 : vector<8x128xf32> to vector<8x128xbf16>
    %c0_12 = arith.constant 0 : index
    %c0_13 = arith.constant 0 : index
    %17 = vector.load %arg6[%c0_12, %c0_13] : memref<128x128xbf16, #tpu.memory_space<vmem>>, vector<128x128xbf16>
    %cst_14 = arith.constant dense<0.000000e+00> : vector<8x128xf32>
    %18 = tpu.matmul %16, %17, %cst_14 {dimension_numbers = #tpu.dot_dimension_numbers<[1], [0], [0], [1], [0, 0, 1, 1], [], []>} : vector<8x128xbf16>, vector<128x128xbf16>, vector<8x128xf32> -> vector<8x128xf32>
    %c0_15 = arith.constant 0 : index
    %c0_16 = arith.constant 0 : index
    %19 = vector.load %arg7[%c0_15, %c0_16] : memref<1x128xf32, #tpu.memory_space<vmem>>, vector<1x128xf32>
    %20 = vector.broadcast %19 : vector<1x128xf32> to vector<8x128xf32>
    %21 = arith.addf %18, %20 : vector<8x128xf32>
    %cst_17 = arith.constant 0.000000e+00 : f32
    %22 = vector.broadcast %cst_17 : f32 to vector<8x128xf32>
    %23 = arith.maximumf %21, %22 : vector<8x128xf32>
    %24 = arith.truncf %23 : vector<8x128xf32> to vector<8x128xbf16>
    %c0_18 = arith.constant 0 : index
    %c0_19 = arith.constant 0 : index
    %25 = vector.load %arg8[%c0_18, %c0_19] : memref<128x128xbf16, #tpu.memory_space<vmem>>, vector<128x128xbf16>
    %cst_20 = arith.constant dense<0.000000e+00> : vector<8x128xf32>
    %26 = tpu.matmul %24, %25, %cst_20 {dimension_numbers = #tpu.dot_dimension_numbers<[1], [0], [0], [1], [0, 0, 1, 1], [], []>} : vector<8x128xbf16>, vector<128x128xbf16>, vector<8x128xf32> -> vector<8x128xf32>
    %c0_21 = arith.constant 0 : index
    %c0_22 = arith.constant 0 : index
    %27 = vector.load %arg9[%c0_21, %c0_22] : memref<1x128xf32, #tpu.memory_space<vmem>>, vector<1x128xf32>
    %28 = vector.broadcast %27 : vector<1x128xf32> to vector<8x128xf32>
    %29 = arith.addf %26, %28 : vector<8x128xf32>
    %cst_23 = arith.constant 0.000000e+00 : f32
    %30 = vector.broadcast %cst_23 : f32 to vector<8x128xf32>
    %31 = arith.maximumf %29, %30 : vector<8x128xf32>
    %32 = arith.truncf %31 : vector<8x128xf32> to vector<8x128xbf16>
    %c0_24 = arith.constant 0 : index
    %c0_25 = arith.constant 0 : index
    %33 = vector.load %arg10[%c0_24, %c0_25] : memref<128x128xbf16, #tpu.memory_space<vmem>>, vector<128x128xbf16>
    %cst_26 = arith.constant dense<0.000000e+00> : vector<8x128xf32>
    %34 = tpu.matmul %32, %33, %cst_26 {dimension_numbers = #tpu.dot_dimension_numbers<[1], [0], [0], [1], [0, 0, 1, 1], [], []>} : vector<8x128xbf16>, vector<128x128xbf16>, vector<8x128xf32> -> vector<8x128xf32>
    %c0_27 = arith.constant 0 : index
    %c0_28 = arith.constant 0 : index
    %35 = vector.load %arg11[%c0_27, %c0_28] : memref<1x128xf32, #tpu.memory_space<vmem>>, vector<1x128xf32>
    %36 = vector.broadcast %35 : vector<1x128xf32> to vector<8x128xf32>
    %37 = arith.addf %34, %36 : vector<8x128xf32>
    %38 = arith.truncf %37 : vector<8x128xf32> to vector<8x128xbf16>
    %c0_29 = arith.constant 0 : index
    %c0_30 = arith.constant 0 : index
    %39 = vector.load %arg12[%c0_29, %c0_30] : memref<8x128xbf16, #tpu.memory_space<vmem>>, vector<8x128xbf16>
    tpu.vector_store %arg12[%c0_29, %c0_30], %38 {strides = array<i32>} : memref<8x128xbf16, #tpu.memory_space<vmem>>, vector<8x128xbf16>,
    return
  }
  func.func @transform_0(%arg0: i32) -> (i32, i32) {
    %c0_i32 = arith.constant 0 : i32
    %c0_i32_0 = arith.constant 0 : i32
    return %arg0, %c0_i32 : i32, i32
  }
  func.func @transform_1(%arg0: i32) -> (i32, i32) {
    %c0_i32 = arith.constant 0 : i32
    %c0_i32_0 = arith.constant 0 : i32
    %c0_i32_1 = arith.constant 0 : i32
    return %c0_i32, %c0_i32_0 : i32, i32
  }
  func.func @transform_2(%arg0: i32) -> (i32, i32) {
    %c0_i32 = arith.constant 0 : i32
    %c0_i32_0 = arith.constant 0 : i32
    %c0_i32_1 = arith.constant 0 : i32
    return %c0_i32, %c0_i32_0 : i32, i32
  }
  func.func @transform_3(%arg0: i32) -> (i32, i32) {
    %c0_i32 = arith.constant 0 : i32
    %c0_i32_0 = arith.constant 0 : i32
    %c0_i32_1 = arith.constant 0 : i32
    return %c0_i32, %c0_i32_0 : i32, i32
  }
  func.func @transform_4(%arg0: i32) -> (i32, i32) {
    %c0_i32 = arith.constant 0 : i32
    %c0_i32_0 = arith.constant 0 : i32
    %c0_i32_1 = arith.constant 0 : i32
    return %c0_i32, %c0_i32_0 : i32, i32
  }
  func.func @transform_5(%arg0: i32) -> (i32, i32) {
    %c0_i32 = arith.constant 0 : i32
    %c0_i32_0 = arith.constant 0 : i32
    %c0_i32_1 = arith.constant 0 : i32
    return %c0_i32, %c0_i32_0 : i32, i32
  }
  func.func @transform_6(%arg0: i32) -> (i32, i32) {
    %c0_i32 = arith.constant 0 : i32
    %c0_i32_0 = arith.constant 0 : i32
    %c0_i32_1 = arith.constant 0 : i32
    return %c0_i32, %c0_i32_0 : i32, i32
  }
  func.func @transform_7(%arg0: i32) -> (i32, i32) {
    %c0_i32 = arith.constant 0 : i32
    %c0_i32_0 = arith.constant 0 : i32
    %c0_i32_1 = arith.constant 0 : i32
    return %c0_i32, %c0_i32_0 : i32, i32
  }
  func.func @transform_8(%arg0: i32) -> (i32, i32) {
    %c0_i32 = arith.constant 0 : i32
    %c0_i32_0 = arith.constant 0 : i32
    %c0_i32_1 = arith.constant 0 : i32
    return %c0_i32, %c0_i32_0 : i32, i32
  }
  func.func @transform_9(%arg0: i32) -> (i32, i32) {
    %c0_i32 = arith.constant 0 : i32
    %c0_i32_0 = arith.constant 0 : i32
    %c0_i32_1 = arith.constant 0 : i32
    return %c0_i32, %c0_i32_0 : i32, i32
  }
  func.func @transform_10(%arg0: i32) -> (i32, i32) {
    %c0_i32 = arith.constant 0 : i32
    %c0_i32_0 = arith.constant 0 : i32
    %c0_i32_1 = arith.constant 0 : i32
    return %c0_i32, %c0_i32_0 : i32, i32
  }
  func.func @transform_11(%arg0: i32) -> (i32, i32) {
    %c0_i32 = arith.constant 0 : i32
    %c0_i32_0 = arith.constant 0 : i32
    return %arg0, %c0_i32 : i32, i32
  }
}

</mosaic_0001>

<bundles_post_ra>
// kernel: _classifier_dnn_forward.1
= control target key start
LH: loop header
LB: loop body
LE: loop exit
PB: predicated region body
PF: predicated region fallthrough
CT: control target
= control target key end

     0   :  { %16 = vsyncpa [#allocation3], 0  ;;  %s1849_s0 = inlined_call_operand.vmem [shape: bf16[16,128], index: 0, kind: input, shape index: {}]   ;;  %s1850_s1 = inlined_call_operand.hbm [shape: bf16[128,128], index: 1, kind: input, shape index: {}]   ;;  %s1851_s2 = inlined_call_operand.vmem [shape: f32[1,128], index: 2, kind: input, shape index: {}]   ;;  %s1852_s3 = inlined_call_operand.hbm [shape: bf16[128,128], index: 3, kind: input, shape index: {}]   ;;  %s1853_s4 = inlined_call_operand.vmem [shape: f32[1,128], index: 4, kind: input, shape index: {}]   ;;  %s1854_s5 = inlined_call_operand.hbm [shape: bf16[128,128], index: 5, kind: input, shape index: {}]   ;;  %s1855_s6 = inlined_call_operand.vmem [shape: f32[1,128], index: 6, kind: input, shape index: {}]   ;;  %s1856_s7 = inlined_call_operand.hbm [shape: bf16[128,128], index: 7, kind: input, shape index: {}]   ;;  %s1857_s8 = inlined_call_operand.vmem [shape: f32[1,128], index: 8, kind: input, shape index: {}]   ;;  %s1858_s9 = inlined_call_operand.hbm [shape: bf16[128,128], index: 9, kind: input, shape index: {}]   ;;  %s1859_s10 = inlined_call_operand.vmem [shape: f32[1,128], index: 10, kind: input, shape index: {}]   ;;  %s1860_s11 = inlined_call_operand.vmem [shape: bf16[16,128], index: 11, kind: output, shape index: {}]  }
   0x1   :  { %17 = vsyncpa [#allocation5], 0 }
   0x2   :  { %18 = vsyncpa [#allocation8], 0  ;;  %s1656_s17 = smov 0  }
   0x3 LB: > { %s1662_s18 = sadd.s32 4294967295, %s1585_s17   ;;  %p1127_p0 = scmp.ge.s32.totalorder %s1585_s17, 1  ;;  %s1585_s17 = sphi %s1656_s17, %s24_s17  }
   0x4   : > { %p291_p1 = scmp.lt.s32.totalorder %s1585_s17, 3  ;;  %p1370_p2 = scmp.eq.s32.totalorder %s1662_s18, 0 }
   0x5   : > { %s1587_s20 = smov [#allocation4]   ;;  %s1588_s22 = smov [#allocation7]  }
   0x6   : > { %p1667_p3 = pnand %p1127_p0, %p291_p1  ;;  %s319_s21 = sshll.u32 %s1587_s20, 4  ;;  %s320_s21 = int_to_ptr.vmem [resolvable:$true] %s319_s21 }
   0x7   : > { %s351_s23 = sshll.u32 %s1588_s22, 4  ;;  %s1589_s25 = smov [#allocation2]   ;;  %s1673_s23 = int_to_ptr.vmem [resolvable:$true] %s351_s23 }
   0x8   : > { %p1354_p4 = pneg %p1667_p3  ;;  %s303_s26 = sshll.u32 %s1589_s25, 4  ;;  %s1681_s26 = int_to_ptr.vmem [resolvable:$true] %s303_s26 }
   0x9   : > { %s1590_s27 = smov [#allocation6]   ;;  %s1448_s30 = scalar_lea.vmem %s320_s21, 1024 }
   0xa   : > { %p1677_p5 = pnand %p1370_p2, %p1354_p4  ;;  %s1683_s28 = sshll.u32 %s1590_s27, 4  ;;  %s336_s28 = int_to_ptr.vmem [resolvable:$true] %s1683_s28 }
   0xb   : > { %p1449_p7 = scmp.ne.s32.totalorder %s320_s21, %s1448_s30  ;;  %p1456_p10 = scmp.lt.s32.totalorder %s320_s21, %s320_s21 }
   0xc   : > { %p1687_p6 = pneg %p1677_p5  ;;  %p1457_p11 = scmp.lt.s32.totalorder %s1448_s30, %s1448_s30 }
   0xe   : > { %p1451_p8 = pnand %p1449_p7, %p1687_p6  ;;  %p1458_p12 = por %p1457_p11, %p1456_p10 }
  0x10   : > { %p1452_p9 = pneg %p1451_p8 }
  0x12   : > { %p1459_p13 = pnand %p1458_p12, %p1452_p9 }
  0x14   : > { %1462 = shalt.err (!%p1459_p13)
}
  0x15   : > { %s1591_s12 = smov 64   ;;  %s1592_s13 = smov 4  }
  0x16   : > { %1360 = dma.hbm_to_vmem [thread:$0]  (!%p1677_p5), %s1852_s3, 1024, %s320_s21, [#allocation5], %s1591_s12, %s1591_s12, %s1592_s13  }
  0x17   : > { %s1474_s16 = scalar_lea.vmem %s1673_s23, 1024  ;;  %p1482_p7 = scmp.lt.s32.totalorder %s1673_s23, %s1673_s23 }
  0x18   : > { %p1475_p0 = scmp.ne.s32.totalorder %s1673_s23, %s1474_s16  ;;  %p1483_p8 = scmp.lt.s32.totalorder %s1474_s16, %s1474_s16 }
  0x1a   : > { %p1477_p1 = pnand %p1475_p0, %p1687_p6  ;;  %p1484_p9 = por %p1483_p8, %p1482_p7 }
  0x1c   : > { %p1478_p4 = pneg %p1477_p1 }
  0x1e   : > { %p1485_p10 = pnand %p1484_p9, %p1478_p4 }
  0x20   : > { %1488 = shalt.err (!%p1485_p10)
}
  0x21   : > { %1366 = dma.hbm_to_vmem [thread:$0]  (!%p1677_p5), %s1856_s7, 1024, %s1673_s23, [#allocation8], %s1591_s12, %s1591_s12, %s1592_s13  }
  0x22   : > { %s1500_s21 = scalar_lea.vmem %s1681_s26, 1024  ;;  %p1508_p0 = scmp.lt.s32.totalorder %s1681_s26, %s1681_s26 }
  0x23   : > { %p1501_p11 = scmp.ne.s32.totalorder %s1681_s26, %s1500_s21  ;;  %p1509_p1 = scmp.lt.s32.totalorder %s1500_s21, %s1500_s21 }
  0x25   : > { %p1503_p12 = pnand %p1501_p11, %p1687_p6  ;;  %p1510_p4 = por %p1509_p1, %p1508_p0 }
  0x27   : > { %p1504_p13 = pneg %p1503_p12 }
  0x29   : > { %p1511_p7 = pnand %p1510_p4, %p1504_p13 }
  0x2b   : > { %1514 = shalt.err (!%p1511_p7)
}
  0x2c   : > { %1357 = dma.hbm_to_vmem [thread:$0]  (!%p1677_p5), %s1850_s1, 1024, %s1681_s26, [#allocation3], %s1591_s12, %s1591_s12, %s1592_s13  }
  0x2d   : > { %s1526_s23 = scalar_lea.vmem %s336_s28, 1024  ;;  %p1534_p11 = scmp.lt.s32.totalorder %s336_s28, %s336_s28 }
  0x2e   : > { %p1527_p8 = scmp.ne.s32.totalorder %s336_s28, %s1526_s23  ;;  %p1535_p12 = scmp.lt.s32.totalorder %s1526_s23, %s1526_s23 }
  0x30   : > { %p1529_p9 = pnand %p1527_p8, %p1687_p6  ;;  %p1536_p13 = por %p1535_p12, %p1534_p11 }
  0x32   : > { %p1530_p10 = pneg %p1529_p9 }
  0x34   : > { %p1537_p0 = pnand %p1536_p13, %p1530_p10 }
  0x36   : > { %1540 = shalt.err (!%p1537_p0)
}
  0x37   : > { %1363 = dma.hbm_to_vmem [thread:$0]  (!%p1677_p5), %s1854_s5, 1024, %s336_s28, [#allocation5], %s1591_s12, %s1591_s12, %s1592_s13  }
  0x38   : > { %s1593_s26 = smov [#allocation9]  }
  0x39   : > { %s367_s15 = sshll.u32 %s1593_s26, 4  ;;  %s368_s15 = int_to_ptr.vmem [resolvable:$true] %s367_s15 }
  0x3a   : > { %s1552_s16 = scalar_lea.vmem %s368_s15, 1024  ;;  %p1560_p8 = scmp.lt.s32.totalorder %s368_s15, %s368_s15 }
  0x3b   : > { %p1553_p1 = scmp.ne.s32.totalorder %s368_s15, %s1552_s16  ;;  %p1561_p9 = scmp.lt.s32.totalorder %s1552_s16, %s1552_s16 }
  0x3d   : > { %p1555_p4 = pnand %p1553_p1, %p1687_p6  ;;  %p1562_p10 = por %p1561_p9, %p1560_p8 }
  0x3f   : > { %p1556_p7 = pneg %p1555_p4 }
  0x41   : > { %p1563_p11 = pnand %p1562_p10, %p1556_p7 }
  0x43   : > { %1566 = shalt.err (!%p1563_p11)
}
  0x44   : > { %1369 = dma.hbm_to_vmem [thread:$0]  (!%p1677_p5), %s1858_s9, 1024, %s368_s15, [#allocation8], %s1591_s12, %s1591_s12, %s1592_s13  }
  0x45   : > { %393 = sbr.rel (%p1667_p3) target bundleno = 1108 (0x454), region = 64 }
  0x4a   : > { %1572 = dma.done.wait (%p1370_p2), [#allocation3], 1024  }
  0x4b   : > { %1574 = vsyncadd (%p1370_p2), [#allocation3], 4294966272 }
  0x4c   : > { %1576 = dma.done.wait (%p1370_p2), [#allocation5], 2048  }
  0x4d   : > { %1578 = vsyncadd (%p1370_p2), [#allocation5], 4294965248 }
  0x4e   : > { %1580 = dma.done.wait (%p1370_p2), [#allocation8], 2048  }
  0x4f   : > { %1582 = vsyncadd (%p1370_p2), [#allocation8], 4294965248  ;;  %v1594_v0 = vmov 0.0   ;;  %vm1595_vm0 = vmmov 0   ;;  %v1397_v1 = vld [vmem:[#allocation2 + $0x38] sm:$0xff]   ;;  %v1398_v2 = vld [vmem:[#allocation2 + $0x30] sm:$0xff]  }
  0x50   : > { %1234 = vmatprep.subr.bf16.mxu0 %v1594_v0  ;;  %1250 = vmatprep.mubr.msk.bf16.mxu0 %vm1595_vm0, %v1594_v0  ;;  %v1399_v3 = vld [vmem:[#allocation2 + $0x28] sm:$0xff]   ;;  %p447_p2 = scmp.lt.s32.totalorder %s1662_s18, 1  ;;  %v1405_v4 = vld [vmem:[#allocation4 + $0x38] sm:$0xff]   ;;  %v1400_v5 = vld [vmem:[#allocation2 + $0x20] sm:$0xff]  }
  0x51   : > { %1254 = vmatprep.subr.bf16.mxu1 %v1594_v0  ;;  %1270 = vmatprep.mubr.msk.bf16.mxu1 %vm1595_vm0, %v1594_v0  ;;  %v1406_v6 = vld [vmem:[#allocation4 + $0x30] sm:$0xff]   ;;  %v1401_v7 = vld [vmem:[#allocation2 + $0x18] sm:$0xff]   ;;  %v1407_v8 = vld [vmem:[#allocation4 + $0x28] sm:$0xff]  }
  0x52   : > { %1235 = vmatpush3.bf16.msra.mxu0 %v1397_v1  ;;  %s1865_s18 = smov (!%p447_p2, %s1662_s18), 1  ;;  %1255 = vmatpush3.bf16.msra.mxu1 %v1405_v4  ;;  %v1402_v9 = vld [vmem:[#allocation2 + $0x10] sm:$0xff]   ;;  %v1408_v10 = vld [vmem:[#allocation4 + $0x20] sm:$0xff]   ;;  %v1403_v11 = vld [vmem:[#allocation2 + $0x8] sm:$0xff]  }
  0x53   : > { %1236 = vmatprep.subr.bf16.mxu0 %v1594_v0  ;;  %1256 = vmatprep.subr.bf16.mxu1 %v1594_v0  ;;  %s1140_s19 = sshll.u32 %s1865_s18, 2  ;;  %v1409_v12 = vld [vmem:[#allocation4 + $0x18] sm:$0xff]   ;;  %v1404_v13 = vld [vmem:[#allocation2] sm:$0xff]   ;;  %v1410_v14 = vld [vmem:[#allocation4 + $0x10] sm:$0xff]  }
  0x54   : > { %s450_s12 = scalar_lea.vmem %s1849_s0, %s1140_s19  ;;  %v1411_v16 = vld [vmem:[#allocation4 + $0x8] sm:$0xff]   ;;  %v1412_v17 = vld [vmem:[#allocation4] sm:$0xff]   ;;  %v1413_v18 = vld [vmem:[#allocation6 + $0x38] sm:$0xff]   ;;  %s454_s28 = scalar_lea.vmem %s1860_s11, %s1140_s19 }
  0x55   : > { %v456_v15 = vld [vmem:[%s450_s12] sm:$0xf]  ;;  %v1414_v19 = vld [vmem:[#allocation6 + $0x30] sm:$0xff]   ;;  %v1415_v20 = vld [vmem:[#allocation6 + $0x28] sm:$0xff]  }
  0x56   : > { %1237 = vmatpush3.bf16.msra.mxu0 %v1398_v2  ;;  %1257 = vmatpush3.bf16.msra.mxu1 %v1406_v6  ;;  %v1416_v21 = vld [vmem:[#allocation6 + $0x20] sm:$0xff]   ;;  %v1417_v22 = vld [vmem:[#allocation6 + $0x18] sm:$0xff]   ;;  %v1418_v23 = vld [vmem:[#allocation6 + $0x10] sm:$0xff]  }
  0x57   : > { %1238 = vmatprep.subr.bf16.mxu0 %v1594_v0  ;;  %1258 = vmatprep.subr.bf16.mxu1 %v1594_v0  ;;  %v1142_v24 = vld [vmem:[%s1851_s2] ss:$0 sm:$0xff]  ;;  %v1419_v32 = vld [vmem:[#allocation6 + $0x8] sm:$0xff]   ;;  %v1421_v34 = vld [vmem:[#allocation7 + $0x38] sm:$0xff]  }
  0x58   : > { %v1420_v33 = vld [vmem:[#allocation6] sm:$0xff]   ;;  %v1422_v35 = vld [vmem:[#allocation7 + $0x30] sm:$0xff]   ;;  %v1423_v36 = vld [vmem:[#allocation7 + $0x28] sm:$0xff]  }
  0x59   : > { %v1424_v37 = vld [vmem:[#allocation7 + $0x20] sm:$0xff]   ;;  %v1425_v38 = vld [vmem:[#allocation7 + $0x18] sm:$0xff]   ;;  %v1426_v39 = vld [vmem:[#allocation7 + $0x10] sm:$0xff]  }
  0x5a   : > { %1239 = vmatpush3.bf16.msra.mxu0 %v1399_v3  ;;  %1259 = vmatpush3.bf16.msra.mxu1 %v1407_v8  ;;  %v1151_v40 = vld [vmem:[%s1853_s4] ss:$0 sm:$0xff]  ;;  %v1427_v48 = vld [vmem:[#allocation7 + $0x8] sm:$0xff]   ;;  %v1429_v50 = vld [vmem:[#allocation9 + $0x38] sm:$0xff]  }
  0x5b   : > { %1240 = vmatprep.subr.bf16.mxu0 %v1594_v0  ;;  %1260 = vmatprep.subr.bf16.mxu1 %v1594_v0  ;;  %v1428_v49 = vld [vmem:[#allocation7] sm:$0xff]   ;;  %v1430_v51 = vld [vmem:[#allocation9 + $0x30] sm:$0xff]   ;;  %v1431_v52 = vld [vmem:[#allocation9 + $0x28] sm:$0xff]  }
  0x5c   : > { %v1432_v53 = vld [vmem:[#allocation9 + $0x20] sm:$0xff]   ;;  %v1433_v54 = vld [vmem:[#allocation9 + $0x18] sm:$0xff]   ;;  %v1434_v55 = vld [vmem:[#allocation9 + $0x10] sm:$0xff]  }
  0x5d   : > { %v1160_v56 = vld [vmem:[%s1855_s6] ss:$0 sm:$0xff]  ;;  %v1435_v1 = vld [vmem:[#allocation9 + $0x8] sm:$0xff]  }
  0x5e   : > { %1241 = vmatpush3.bf16.msra.mxu0 %v1400_v5  ;;  %1261 = vmatpush3.bf16.msra.mxu1 %v1408_v10  ;;  %v1436_v2 = vld [vmem:[#allocation9] sm:$0xff]  }
  0x5f   : > { %1242 = vmatprep.subr.bf16.mxu0 %v1594_v0  ;;  %1262 = vmatprep.subr.bf16.mxu1 %v1594_v0  ;;  %v1169_v3 = vld [vmem:[%s1857_s8] ss:$0 sm:$0xff] }
  0x62   : > { %1243 = vmatpush3.bf16.msra.mxu0 %v1401_v7  ;;  %1263 = vmatpush3.bf16.msra.mxu1 %v1409_v12 }
  0x63   : > { %1244 = vmatprep.subr.bf16.mxu0 %v1594_v0  ;;  %1264 = vmatprep.subr.bf16.mxu1 %v1594_v0 }
  0x66   : > { %1245 = vmatpush3.bf16.msra.mxu0 %v1402_v9  ;;  %1265 = vmatpush3.bf16.msra.mxu1 %v1410_v14 }
  0x67   : > { %1246 = vmatprep.subr.bf16.mxu0 %v1594_v0  ;;  %1266 = vmatprep.subr.bf16.mxu1 %v1594_v0 }
  0x6a   : > { %1247 = vmatpush3.bf16.msra.mxu0 %v1403_v11  ;;  %1267 = vmatpush3.bf16.msra.mxu1 %v1411_v16  ;;  %v1178_v11 = vld [vmem:[%s1859_s10] ss:$0 sm:$0xff] }
  0x6b   : > { %1248 = vmatprep.subr.bf16.mxu0 %v1594_v0  ;;  %1268 = vmatprep.subr.bf16.mxu1 %v1594_v0 }
  0x6e   : > { %1249 = vmatpush3.bf16.msra.mxu0 %v1404_v13  ;;  %1269 = vmatpush3.bf16.msra.mxu1 %v1412_v17 }
  0x6f   : > { %1274 = vmatprep.subr.bf16.mxu0 %v1594_v0  ;;  %1294 = vmatprep.subr.bf16.mxu1 %v1594_v0 }
  0x71   : > { %1251 = vmatmul.mubr.bf16.vlgmr.msra.gmra.mxu0 %v456_v15 }
  0x72   : > { %1290 = vmatprep.mubr.msk.bf16.mxu0 %vm1595_vm0, %v1594_v0  ;;  %1275 = vmatpush3.bf16.msra.mxu0 %v1413_v18 }
  0x73   : > { %1276 = vmatprep.subr.bf16.mxu0 %v1594_v0 }
  0x76   : > { %1277 = vmatpush3.bf16.msra.mxu0 %v1414_v19 }
  0x77   : > { %1278 = vmatprep.subr.bf16.mxu0 %v1594_v0 }
  0x7a   : > { %1279 = vmatpush3.bf16.msra.mxu0 %v1415_v20 }
  0x7b   : > { %1280 = vmatprep.subr.bf16.mxu0 %v1594_v0 }
  0x7e   : > { %1281 = vmatpush3.bf16.msra.mxu0 %v1416_v21 }
  0x7f   : > { %1282 = vmatprep.subr.bf16.mxu0 %v1594_v0 }
  0x82   : > { %1283 = vmatpush3.bf16.msra.mxu0 %v1417_v22 }
  0x83   : > { %1284 = vmatprep.subr.bf16.mxu0 %v1594_v0 }
  0x86   : > { %1285 = vmatpush3.bf16.msra.mxu0 %v1418_v23 }
  0x87   : > { %1286 = vmatprep.subr.bf16.mxu0 %v1594_v0 }
  0x8a   : > { %1287 = vmatpush3.bf16.msra.mxu0 %v1419_v32 }
  0x8b   : > { %1288 = vmatprep.subr.bf16.mxu0 %v1594_v0 }
  0x8e   : > { %1289 = vmatpush3.bf16.msra.mxu0 %v1420_v33 }
  0x8f   : > { %1314 = vmatprep.subr.bf16.mxu0 %v1594_v0 }
 0x131   : > { %v562_v25 = vpop.f32.mrf.mxu0 }
 0x132   : > { %v563_v26 = vadd.f32 %v1142_v24, %v562_v25 }
 0x133   : > { %v1252_v27 = vpop.f32.mrf.mxu0 }
 0x134   : > { %v568_v28 = vmax.f32 %v563_v26, 0.0 }
 0x135   : > { %v565_v29 = vpop.f32.mrf.mxu0 }
 0x136   : > { %v569_v30 = vpack.c.bf16 %v568_v28, %v568_v28 }
 0x137   : > { %v1253_v31 = vpop.f32.mrf.mxu0 }
 0x138   : > { %1271 = vmatmul.mubr.bf16.vlgmr.msra.gmra.mxu1 %v569_v30 }
 0x139   : > { %1310 = vmatprep.mubr.msk.bf16.mxu1 %vm1595_vm0, %v1594_v0  ;;  %1295 = vmatpush3.bf16.msra.mxu1 %v1421_v34 }
 0x13a   : > { %1296 = vmatprep.subr.bf16.mxu1 %v1594_v0 }
 0x13d   : > { %1297 = vmatpush3.bf16.msra.mxu1 %v1422_v35 }
 0x13e   : > { %1298 = vmatprep.subr.bf16.mxu1 %v1594_v0 }
 0x141   : > { %1299 = vmatpush3.bf16.msra.mxu1 %v1423_v36 }
 0x142   : > { %1300 = vmatprep.subr.bf16.mxu1 %v1594_v0 }
 0x145   : > { %1301 = vmatpush3.bf16.msra.mxu1 %v1424_v37 }
 0x146   : > { %1302 = vmatprep.subr.bf16.mxu1 %v1594_v0 }
 0x149   : > { %1303 = vmatpush3.bf16.msra.mxu1 %v1425_v38 }
 0x14a   : > { %1304 = vmatprep.subr.bf16.mxu1 %v1594_v0 }
 0x14d   : > { %1305 = vmatpush3.bf16.msra.mxu1 %v1426_v39 }
 0x14e   : > { %1306 = vmatprep.subr.bf16.mxu1 %v1594_v0 }
 0x151   : > { %1307 = vmatpush3.bf16.msra.mxu1 %v1427_v48 }
 0x152   : > { %1308 = vmatprep.subr.bf16.mxu1 %v1594_v0 }
 0x155   : > { %1309 = vmatpush3.bf16.msra.mxu1 %v1428_v49 }
 0x1f8   : > { %v675_v41 = vpop.f32.mrf.mxu1 }
 0x1f9   : > { %v676_v42 = vadd.f32 %v1151_v40, %v675_v41 }
 0x1fa   : > { %v1272_v43 = vpop.f32.mrf.mxu1 }
 0x1fb   : > { %v681_v44 = vmax.f32 %v676_v42, 0.0 }
 0x1fc   : > { %v678_v45 = vpop.f32.mrf.mxu1 }
 0x1fd   : > { %v682_v46 = vpack.c.bf16 %v681_v44, %v681_v44 }
 0x1fe   : > { %v1273_v47 = vpop.f32.mrf.mxu1 }
 0x1ff   : > { %1291 = vmatmul.mubr.bf16.vlgmr.msra.gmra.mxu0 %v682_v46 }
 0x200   : > { %1330 = vmatprep.mubr.msk.bf16.mxu0 %vm1595_vm0, %v1594_v0  ;;  %1315 = vmatpush3.bf16.msra.mxu0 %v1429_v50 }
 0x201   : > { %1316 = vmatprep.subr.bf16.mxu0 %v1594_v0 }
 0x204   : > { %1317 = vmatpush3.bf16.msra.mxu0 %v1430_v51 }
 0x205   : > { %1318 = vmatprep.subr.bf16.mxu0 %v1594_v0 }
 0x208   : > { %1319 = vmatpush3.bf16.msra.mxu0 %v1431_v52 }
 0x209   : > { %1320 = vmatprep.subr.bf16.mxu0 %v1594_v0 }
 0x20c   : > { %1321 = vmatpush3.bf16.msra.mxu0 %v1432_v53 }
 0x20d   : > { %1322 = vmatprep.subr.bf16.mxu0 %v1594_v0 }
 0x210   : > { %1323 = vmatpush3.bf16.msra.mxu0 %v1433_v54 }
 0x211   : > { %1324 = vmatprep.subr.bf16.mxu0 %v1594_v0 }
 0x214   : > { %1325 = vmatpush3.bf16.msra.mxu0 %v1434_v55 }
 0x215   : > { %1326 = vmatprep.subr.bf16.mxu0 %v1594_v0 }
 0x218   : > { %1327 = vmatpush3.bf16.msra.mxu0 %v1435_v1 }
 0x219   : > { %1328 = vmatprep.subr.bf16.mxu0 %v1594_v0 }
 0x21c   : > { %1329 = vmatpush3.bf16.msra.mxu0 %v1436_v2 }
 0x2bf   : > { %v788_v57 = vpop.f32.mrf.mxu0 }
 0x2c0   : > { %v789_v58 = vadd.f32 %v1160_v56, %v788_v57 }
 0x2c1   : > { %v1292_v59 = vpop.f32.mrf.mxu0 }
 0x2c2   : > { %v794_v60 = vmax.f32 %v789_v58, 0.0 }
 0x2c3   : > { %v791_v61 = vpop.f32.mrf.mxu0 }
 0x2c4   : > { %v795_v62 = vpack.c.bf16 %v794_v60, %v794_v60 }
 0x2c5   : > { %v1293_v63 = vpop.f32.mrf.mxu0 }
 0x2c6   : > { %1311 = vmatmul.mubr.bf16.vlgmr.msra.gmra.mxu1 %v795_v62 }
 0x386   : > { %v901_v4 = vpop.f32.mrf.mxu1 }
 0x387   : > { %v902_v5 = vadd.f32 %v1169_v3, %v901_v4 }
 0x388   : > { %v1312_v6 = vpop.f32.mrf.mxu1 }
 0x389   : > { %v907_v7 = vmax.f32 %v902_v5, 0.0 }
 0x38a   : > { %v904_v8 = vpop.f32.mrf.mxu1 }
 0x38b   : > { %v908_v9 = vpack.c.bf16 %v907_v7, %v907_v7 }
 0x38c   : > { %v1313_v10 = vpop.f32.mrf.mxu1 }
 0x38d   : > { %1331 = vmatmul.mubr.bf16.vlgmr.msra.gmra.mxu0 %v908_v9 }
 0x44d   : > { %v1014_v12 = vpop.f32.mrf.mxu0 }
 0x44e   : > { %v1015_v0 = vadd.f32 %v1178_v11, %v1014_v12 }
 0x44f   : > { %v1332_v13 = vpop.f32.mrf.mxu0 }
 0x450   : > { %v1020_v14 = vpack.c.bf16 %v1015_v0, %v1015_v0 }
 0x451   : > { %v1017_v15 = vpop.f32.mrf.mxu0 }
 0x452   : > { %1021 = vst [vmem:[%s454_s28] sm:$0xf] %v1020_v14 }
 0x453   : > { %v1333_v16 = vpop.f32.mrf.mxu0 }
 0x454 PF: > { %s24_s17 = sadd.s32 1, %s1585_s17  }
 0x455   : > { %p21_p3 = scmp.ge.s32.totalorder %s24_s17, 4  }
 0x457   :  { %23 = sbr.rel (!%p21_p3) target bundleno = 3 (0x3), region = 115 }
 0x45c   :  { %1041 = vsyncpa [#allocation3], 1 }
 0x45d   :  { %1043 = vsyncpa [#allocation3 + $0x1], 1 }
 0x45e   :  { %1044 = vsyncpa [#allocation5], 1 }
 0x45f   :  { %1045 = vsyncpa [#allocation8], 1 }

</bundles_post_ra>
